<compile_context>
chip_gen: v7x
topology: tpu7x:2x2x1
jax: 0.10.0
libtpu: 0.0.40
codegen_flags: <defaults>
</compile_context>

<pallas_src>
import functools

import jax
import jax.numpy as jnp
from jax.experimental import pallas as pl
from jax.experimental.pallas import tpu as pltpu


def _round_up(x, m):
    return (x + m - 1) // m * m


def _fused_mlp_kernel(*refs, num_linear, tanh):
    # refs = (x_ref, w0, b0, w1, b1, ..., w_{n-1}, b_{n-1}, o_ref)
    x_ref = refs[0]
    o_ref = refs[-1]
    h = x_ref[...].astype(jnp.float32)
    for i in range(num_linear):            # unrolled — activations never leave chip
        w = refs[1 + 2 * i][...]
        b = refs[2 + 2 * i][...]
        # MXU matmul; LHS cast to the weight dtype (f32 or bf16), f32 accumulate.
        y = jnp.dot(h.astype(w.dtype), w, preferred_element_type=jnp.float32)
        y = y + b.astype(jnp.float32)      # bias add + activation kept in f32 (v5e-safe)
        if i < num_linear - 1:
            # Plain SiLU: the 0.909 LipSwish scale is folded into the next W.
            y = y * jax.nn.sigmoid(y)
        elif tanh:
            y = jnp.tanh(y)
        h = y
    o_ref[...] = h.astype(o_ref.dtype)


def init_mlp_params(key, in_size, out_size, mlp_size, num_layers):
    """Deterministic params matching torch.nn.Linear shapes.

    Weights are stored already transposed to (in_features, out_features)."""
    sizes = [(in_size, mlp_size)]
    for _ in range(num_layers - 1):
        sizes.append((mlp_size, mlp_size))
    sizes.append((mlp_size, out_size))

    params = []
    for (din, dout) in sizes:
        key, kw, kb = jax.random.split(key, 3)
        bound = 1.0 / jnp.sqrt(din)
        w = jax.random.uniform(kw, (din, dout), jnp.float32, -bound, bound)
        bvec = jax.random.uniform(kb, (dout,), jnp.float32, -bound, bound)
        params.append((w, bvec))
    return params


def _prepare_params(params, use_bf16):
    """Zero-pad to lane-dense shapes (multiples of 128) and fold the 0.909
    LipSwish scale of the preceding activation into every W except the first.
    Biases stay f32; weights optionally bf16 for the MXU."""
    w_dtype = jnp.bfloat16 if use_bf16 else jnp.float32
    prepared = []
    for i, (w, bvec) in enumerate(params):
        din, dout = w.shape
        din_p, dout_p = _round_up(din, 128), _round_up(dout, 128)
        scale = 0.909 if i > 0 else 1.0
        w_p = jnp.zeros((din_p, dout_p), jnp.float32).at[:din, :dout].set(scale * w)
        b_p = jnp.zeros((1, dout_p), jnp.float32).at[0, :dout].set(bvec)
        prepared.append((w_p.astype(w_dtype), b_p))
    return prepared


@functools.partial(jax.jit, static_argnames=("tanh", "use_bf16", "batch_tile"))
def mlp_forward(x, params, tanh, *, use_bf16=False, batch_tile=256):
    """Fused MLP forward: one pallas_call for all layers."""
    B, Din = x.shape
    out_size = params[-1][0].shape[1]
    prepared = _prepare_params(params, use_bf16)
    n = len(prepared)

    din0_p = prepared[0][0].shape[0]
    dout_p = prepared[-1][0].shape[1]

    # Batch padding / tiling (tile axis marked "parallel" -> megacore on v7x).
    b_p = _round_up(B, 8)
    tb = min(b_p, _round_up(batch_tile, 8))
    b_p = _round_up(b_p, tb)
    x_p = jnp.zeros((b_p, din0_p), jnp.float32).at[:B, :Din].set(x)

    flat_params = []
    for (w, b) in prepared:
        flat_params += [w, b]

    in_specs = [pl.BlockSpec((tb, din0_p), lambda i: (i, 0))]
    for (w, b) in prepared:
        # Constant block index across the batch grid -> weights stay resident
        # in VMEM (no re-DMA per batch tile).
        in_specs.append(pl.BlockSpec(w.shape, lambda i: (0, 0)))
        in_specs.append(pl.BlockSpec(b.shape, lambda i: (0, 0)))
    out_spec = pl.BlockSpec((tb, dout_p), lambda i: (i, 0))

    # Advisory cost estimate for XLA scheduling around the custom call.
    flops = 0
    trans = 0
    bytes_acc = b_p * din0_p * 4 + b_p * dout_p * 4
    for idx, (w, b) in enumerate(prepared):
        flops += 2 * b_p * w.shape[0] * w.shape[1]
        bytes_acc += w.size * w.dtype.itemsize + b.size * b.dtype.itemsize
        if idx < n - 1:
            trans += b_p * w.shape[1]          # one sigmoid per hidden element
    if tanh:
        trans += b_p * dout_p

    # Resident VMEM footprint: all weights/biases + double-buffered in/out tiles
    # (+ headroom for the unrolled-layer live activations). Capped at 64 MiB so
    # the request is valid on v7x as well as v5e/v6e.
    param_bytes = sum(w.size * w.dtype.itemsize + b.size * b.dtype.itemsize
                      for (w, b) in prepared)
    tile_bytes = 2 * (tb * din0_p * 4 + tb * dout_p * 4)
    max_feat = max(w.shape[1] for (w, _) in prepared)
    vmem_bytes = param_bytes + 2 * tile_bytes + 4 * tb * max_feat * 4
    vmem_bytes = min(64 * 1024 * 1024, max(32 * 1024 * 1024, int(1.5 * vmem_bytes)))

    kernel = functools.partial(_fused_mlp_kernel, num_linear=n, tanh=tanh)
    out_p = pl.pallas_call(
        kernel,
        out_shape=jax.ShapeDtypeStruct((b_p, dout_p), jnp.float32),
        grid_spec=pltpu.PrefetchScalarGridSpec(
            num_scalar_prefetch=0,
            grid=(b_p // tb,),
            in_specs=in_specs,
            out_specs=out_spec,
        ),
        compiler_params=pltpu.CompilerParams(
            dimension_semantics=("parallel",),
            vmem_limit_bytes=vmem_bytes,
        ),
        cost_estimate=pl.CostEstimate(
            flops=flops, transcendentals=trans, bytes_accessed=bytes_acc
        ),
    )(x_p, *flat_params)

    return out_p[:B, :out_size]


def mlp_reference(x, params, tanh):
    """Pure-JAX reference (original LipSwish formulation, no folding)."""
    n = len(params)
    h = x
    for i, (w, bvec) in enumerate(params):
        h = h @ w + bvec
        if i < n - 1:
            h = 0.909 * h * jax.nn.sigmoid(h)
        elif tanh:
            h = jnp.tanh(h)
    return h


if __name__ == "__main__":
    in_size, out_size, mlp_size, num_layers, tanh = 4, 3, 32, 3, True
    batch = 8

    key = jax.random.PRNGKey(0)
    key, kx = jax.random.split(key)
    x = jax.random.normal(kx, (batch, in_size), jnp.float32)

    params = init_mlp_params(key, in_size, out_size, mlp_size, num_layers)
    ref = mlp_reference(x, params, tanh)

    # f32 path — must match the reference tightly.
    out = jax.block_until_ready(mlp_forward(x, params, tanh, use_bf16=False))
    assert out.shape == (batch, out_size)
    assert jnp.allclose(out, ref, atol=1e-5, rtol=1e-5)

    # bf16-MXU path (f32 accumulation + f32 epilogue) — looser tolerance.
    out_bf16 = jax.block_until_ready(mlp_forward(x, params, tanh, use_bf16=True))
    assert out_bf16.shape == (batch, out_size)
    assert jnp.allclose(out_bf16, ref, atol=5e-2, rtol=5e-2)

    print("KERNEL_OK")
</pallas_src>

<mosaic_0001>
module attributes {stable_mosaic.version = 11 : i64} {
  func.func @_fused_mlp_kernel(%arg0: i32, %arg1: memref<8x128xf32, #tpu.memory_space<vmem>>, %arg2: memref<128x128xf32, #tpu.memory_space<vmem>>, %arg3: memref<1x128xf32, #tpu.memory_space<vmem>>, %arg4: memref<128x128xf32, #tpu.memory_space<vmem>>, %arg5: memref<1x128xf32, #tpu.memory_space<vmem>>, %arg6: memref<128x128xf32, #tpu.memory_space<vmem>>, %arg7: memref<1x128xf32, #tpu.memory_space<vmem>>, %arg8: memref<128x128xf32, #tpu.memory_space<vmem>>, %arg9: memref<1x128xf32, #tpu.memory_space<vmem>>, %arg10: memref<8x128xf32, #tpu.memory_space<vmem>>) attributes {dimension_semantics = [#tpu.dimension_semantics<parallel>], iteration_bounds = array<i64: 1>, scalar_prefetch = 0 : i64, scratch_operands = 0 : i64, tpu.core_type = #tpu.core_type<tc>, window_params = [{transform_indices = @transform_0, window_bounds = array<i64: 8, 128>}, {pipeline_mode = #tpu.pipeline_mode<synchronous>, transform_indices = @transform_1, window_bounds = array<i64: 128, 128>}, {pipeline_mode = #tpu.pipeline_mode<synchronous>, transform_indices = @transform_2, window_bounds = array<i64: 1, 128>}, {pipeline_mode = #tpu.pipeline_mode<synchronous>, transform_indices = @transform_3, window_bounds = array<i64: 128, 128>}, {pipeline_mode = #tpu.pipeline_mode<synchronous>, transform_indices = @transform_4, window_bounds = array<i64: 1, 128>}, {pipeline_mode = #tpu.pipeline_mode<synchronous>, transform_indices = @transform_5, window_bounds = array<i64: 128, 128>}, {pipeline_mode = #tpu.pipeline_mode<synchronous>, transform_indices = @transform_6, window_bounds = array<i64: 1, 128>}, {pipeline_mode = #tpu.pipeline_mode<synchronous>, transform_indices = @transform_7, window_bounds = array<i64: 128, 128>}, {pipeline_mode = #tpu.pipeline_mode<synchronous>, transform_indices = @transform_8, window_bounds = array<i64: 1, 128>}, {transform_indices = @transform_9, window_bounds = array<i64: 8, 128>}]} {
    %c0 = arith.constant 0 : index
    %c0_0 = arith.constant 0 : index
    %0 = vector.load %arg1[%c0, %c0_0] : memref<8x128xf32, #tpu.memory_space<vmem>>, vector<8x128xf32>
    %c0_1 = arith.constant 0 : index
    %c0_2 = arith.constant 0 : index
    %1 = vector.load %arg2[%c0_1, %c0_2] : memref<128x128xf32, #tpu.memory_space<vmem>>, vector<128x128xf32>
    %c0_3 = arith.constant 0 : index
    %c0_4 = arith.constant 0 : index
    %2 = vector.load %arg3[%c0_3, %c0_4] : memref<1x128xf32, #tpu.memory_space<vmem>>, vector<1x128xf32>
    %cst = arith.constant dense<0.000000e+00> : vector<8x128xf32>
    %3 = tpu.matmul %0, %1, %cst {dimension_numbers = #tpu.dot_dimension_numbers<[1], [0], [0], [1], [0, 0, 1, 1], [], []>} : vector<8x128xf32>, vector<128x128xf32>, vector<8x128xf32> -> vector<8x128xf32>
    %4 = vector.broadcast %2 : vector<1x128xf32> to vector<8x128xf32>
    %5 = arith.addf %3, %4 : vector<8x128xf32>
    %6 = arith.negf %5 : vector<8x128xf32>
    %7 = math.exp %6 : vector<8x128xf32>
    %cst_5 = arith.constant 1.000000e+00 : f32
    %8 = vector.broadcast %cst_5 : f32 to vector<8x128xf32>
    %9 = arith.addf %8, %7 : vector<8x128xf32>
    %10 = arith.divf %8, %9 : vector<8x128xf32>
    %11 = arith.mulf %5, %10 : vector<8x128xf32>
    %c0_6 = arith.constant 0 : index
    %c0_7 = arith.constant 0 : index
    %12 = vector.load %arg4[%c0_6, %c0_7] : memref<128x128xf32, #tpu.memory_space<vmem>>, vector<128x128xf32>
    %c0_8 = arith.constant 0 : index
    %c0_9 = arith.constant 0 : index
    %13 = vector.load %arg5[%c0_8, %c0_9] : memref<1x128xf32, #tpu.memory_space<vmem>>, vector<1x128xf32>
    %cst_10 = arith.constant dense<0.000000e+00> : vector<8x128xf32>
    %14 = tpu.matmul %11, %12, %cst_10 {dimension_numbers = #tpu.dot_dimension_numbers<[1], [0], [0], [1], [0, 0, 1, 1], [], []>} : vector<8x128xf32>, vector<128x128xf32>, vector<8x128xf32> -> vector<8x128xf32>
    %15 = vector.broadcast %13 : vector<1x128xf32> to vector<8x128xf32>
    %16 = arith.addf %14, %15 : vector<8x128xf32>
    %17 = arith.negf %16 : vector<8x128xf32>
    %18 = math.exp %17 : vector<8x128xf32>
    %cst_11 = arith.constant 1.000000e+00 : f32
    %19 = vector.broadcast %cst_11 : f32 to vector<8x128xf32>
    %20 = arith.addf %19, %18 : vector<8x128xf32>
    %21 = arith.divf %19, %20 : vector<8x128xf32>
    %22 = arith.mulf %16, %21 : vector<8x128xf32>
    %c0_12 = arith.constant 0 : index
    %c0_13 = arith.constant 0 : index
    %23 = vector.load %arg6[%c0_12, %c0_13] : memref<128x128xf32, #tpu.memory_space<vmem>>, vector<128x128xf32>
    %c0_14 = arith.constant 0 : index
    %c0_15 = arith.constant 0 : index
    %24 = vector.load %arg7[%c0_14, %c0_15] : memref<1x128xf32, #tpu.memory_space<vmem>>, vector<1x128xf32>
    %cst_16 = arith.constant dense<0.000000e+00> : vector<8x128xf32>
    %25 = tpu.matmul %22, %23, %cst_16 {dimension_numbers = #tpu.dot_dimension_numbers<[1], [0], [0], [1], [0, 0, 1, 1], [], []>} : vector<8x128xf32>, vector<128x128xf32>, vector<8x128xf32> -> vector<8x128xf32>
    %26 = vector.broadcast %24 : vector<1x128xf32> to vector<8x128xf32>
    %27 = arith.addf %25, %26 : vector<8x128xf32>
    %28 = arith.negf %27 : vector<8x128xf32>
    %29 = math.exp %28 : vector<8x128xf32>
    %cst_17 = arith.constant 1.000000e+00 : f32
    %30 = vector.broadcast %cst_17 : f32 to vector<8x128xf32>
    %31 = arith.addf %30, %29 : vector<8x128xf32>
    %32 = arith.divf %30, %31 : vector<8x128xf32>
    %33 = arith.mulf %27, %32 : vector<8x128xf32>
    %c0_18 = arith.constant 0 : index
    %c0_19 = arith.constant 0 : index
    %34 = vector.load %arg8[%c0_18, %c0_19] : memref<128x128xf32, #tpu.memory_space<vmem>>, vector<128x128xf32>
    %c0_20 = arith.constant 0 : index
    %c0_21 = arith.constant 0 : index
    %35 = vector.load %arg9[%c0_20, %c0_21] : memref<1x128xf32, #tpu.memory_space<vmem>>, vector<1x128xf32>
    %cst_22 = arith.constant dense<0.000000e+00> : vector<8x128xf32>
    %36 = tpu.matmul %33, %34, %cst_22 {dimension_numbers = #tpu.dot_dimension_numbers<[1], [0], [0], [1], [0, 0, 1, 1], [], []>} : vector<8x128xf32>, vector<128x128xf32>, vector<8x128xf32> -> vector<8x128xf32>
    %37 = vector.broadcast %35 : vector<1x128xf32> to vector<8x128xf32>
    %38 = arith.addf %36, %37 : vector<8x128xf32>
    %39 = math.tanh %38 : vector<8x128xf32>
    %c0_23 = arith.constant 0 : index
    %c0_24 = arith.constant 0 : index
    %40 = vector.load %arg10[%c0_23, %c0_24] : memref<8x128xf32, #tpu.memory_space<vmem>>, vector<8x128xf32>
    tpu.vector_store %arg10[%c0_23, %c0_24], %39 {strides = array<i32>} : memref<8x128xf32, #tpu.memory_space<vmem>>, vector<8x128xf32>,
    return
  }
  func.func @transform_0(%arg0: i32) -> (i32, i32) {
    %c0_i32 = arith.constant 0 : i32
    %c0_i32_0 = arith.constant 0 : i32
    return %arg0, %c0_i32 : i32, i32
  }
  func.func @transform_1(%arg0: i32) -> (i32, i32) {
    %c0_i32 = arith.constant 0 : i32
    %c0_i32_0 = arith.constant 0 : i32
    %c0_i32_1 = arith.constant 0 : i32
    return %c0_i32, %c0_i32_0 : i32, i32
  }
  func.func @transform_2(%arg0: i32) -> (i32, i32) {
    %c0_i32 = arith.constant 0 : i32
    %c0_i32_0 = arith.constant 0 : i32
    %c0_i32_1 = arith.constant 0 : i32
    return %c0_i32, %c0_i32_0 : i32, i32
  }
  func.func @transform_3(%arg0: i32) -> (i32, i32) {
    %c0_i32 = arith.constant 0 : i32
    %c0_i32_0 = arith.constant 0 : i32
    %c0_i32_1 = arith.constant 0 : i32
    return %c0_i32, %c0_i32_0 : i32, i32
  }
  func.func @transform_4(%arg0: i32) -> (i32, i32) {
    %c0_i32 = arith.constant 0 : i32
    %c0_i32_0 = arith.constant 0 : i32
    %c0_i32_1 = arith.constant 0 : i32
    return %c0_i32, %c0_i32_0 : i32, i32
  }
  func.func @transform_5(%arg0: i32) -> (i32, i32) {
    %c0_i32 = arith.constant 0 : i32
    %c0_i32_0 = arith.constant 0 : i32
    %c0_i32_1 = arith.constant 0 : i32
    return %c0_i32, %c0_i32_0 : i32, i32
  }
  func.func @transform_6(%arg0: i32) -> (i32, i32) {
    %c0_i32 = arith.constant 0 : i32
    %c0_i32_0 = arith.constant 0 : i32
    %c0_i32_1 = arith.constant 0 : i32
    return %c0_i32, %c0_i32_0 : i32, i32
  }
  func.func @transform_7(%arg0: i32) -> (i32, i32) {
    %c0_i32 = arith.constant 0 : i32
    %c0_i32_0 = arith.constant 0 : i32
    %c0_i32_1 = arith.constant 0 : i32
    return %c0_i32, %c0_i32_0 : i32, i32
  }
  func.func @transform_8(%arg0: i32) -> (i32, i32) {
    %c0_i32 = arith.constant 0 : i32
    %c0_i32_0 = arith.constant 0 : i32
    %c0_i32_1 = arith.constant 0 : i32
    return %c0_i32, %c0_i32_0 : i32, i32
  }
  func.func @transform_9(%arg0: i32) -> (i32, i32) {
    %c0_i32 = arith.constant 0 : i32
    %c0_i32_0 = arith.constant 0 : i32
    return %arg0, %c0_i32 : i32, i32
  }
}

</mosaic_0001>

<bundles_post_ra>
// kernel: mlp_forward.1
= control target key start
LH: loop header
LB: loop body
LE: loop exit
PB: predicated region body
PF: predicated region fallthrough
CT: control target
= control target key end

     0   :  { %v760_v0 = vmov 0.0|0.0   ;;  %vm761_vm0 = vmmov 0   ;;  %v762_v4 = vmov 0.0   ;;  %s1063_s1 = inlined_call_operand.vmem [shape: f32[128,128], index: 1, kind: input, shape index: {}]   ;;  %s1064_s0 = inlined_call_operand.vmem [shape: f32[8,128], index: 0, kind: input, shape index: {}]   ;;  %s1065_s3 = inlined_call_operand.vmem [shape: f32[128,128], index: 3, kind: input, shape index: {}]   ;;  %s1066_s2 = inlined_call_operand.vmem [shape: f32[1,128], index: 2, kind: input, shape index: {}]   ;;  %s1067_s5 = inlined_call_operand.vmem [shape: f32[128,128], index: 5, kind: input, shape index: {}]   ;;  %s1068_s4 = inlined_call_operand.vmem [shape: f32[1,128], index: 4, kind: input, shape index: {}]   ;;  %s1069_s7 = inlined_call_operand.vmem [shape: f32[128,128], index: 7, kind: input, shape index: {}]   ;;  %s1070_s6 = inlined_call_operand.vmem [shape: f32[1,128], index: 6, kind: input, shape index: {}]   ;;  %s1071_s8 = inlined_call_operand.vmem [shape: f32[1,128], index: 8, kind: input, shape index: {}]   ;;  %s1072_s9 = inlined_call_operand.vmem [shape: f32[8,128], index: 9, kind: output, shape index: {}]  }
   0x1   :  { %647 = vmatprep.subr.bf16.mxu0 %v760_v0  ;;  %v33_v1 = vld [vmem:[%s1063_s1] sm:$0xff]  ;;  %v34_v2 = vld [vmem:[%s1063_s1 + $0x8] sm:$0xff]  ;;  %v35_v3 = vld [vmem:[%s1063_s1 + $0x10] sm:$0xff]  ;;  %539 = vmatprep.mubr.msk.f32.mxu0 %vm761_vm0, %v762_v4 }
   0x2   :  { %v648_v5 = vpack.c.bf16 %v34_v2, %v33_v1  ;;  %v36_v6 = vld [vmem:[%s1063_s1 + $0x18] sm:$0xff]  ;;  %671 = vmatprep.subr.bf16.mxu1 %v760_v0  ;;  %574 = vmatprep.mubr.msk.f32.mxu1 %vm761_vm0, %v762_v4  ;;  %v37_v8 = vld [vmem:[%s1063_s1 + $0x20] sm:$0xff]  ;;  %v38_v9 = vld [vmem:[%s1063_s1 + $0x28] sm:$0xff] }
   0x3   :  { %v651_v7 = vpack.c.bf16 %v36_v6, %v35_v3  ;;  %v654_v10 = vpack.c.bf16 %v38_v9, %v37_v8  ;;  %v39_v11 = vld [vmem:[%s1063_s1 + $0x30] sm:$0xff]  ;;  %v40_v12 = vld [vmem:[%s1063_s1 + $0x38] sm:$0xff]  ;;  %v41_v14 = vld [vmem:[%s1063_s1 + $0x40] sm:$0xff] }
   0x4   :  { %649 = vmatpush3.bf16.msra.mxu0 %v648_v5  ;;  %v657_v13 = vpack.c.bf16 %v40_v12, %v39_v11  ;;  %v42_v15 = vld [vmem:[%s1063_s1 + $0x48] sm:$0xff]  ;;  %v43_v17 = vld [vmem:[%s1063_s1 + $0x50] sm:$0xff]  ;;  %v44_v18 = vld [vmem:[%s1063_s1 + $0x58] sm:$0xff] }
   0x5   :  { %650 = vmatprep.subr.bf16.mxu0 %v760_v0  ;;  %v660_v16 = vpack.c.bf16 %v42_v15, %v41_v14  ;;  %v663_v19 = vpack.c.bf16 %v44_v18, %v43_v17  ;;  %v45_v20 = vld [vmem:[%s1063_s1 + $0x60] sm:$0xff]  ;;  %v46_v21 = vld [vmem:[%s1063_s1 + $0x68] sm:$0xff]  ;;  %v47_v23 = vld [vmem:[%s1063_s1 + $0x70] sm:$0xff] }
   0x6   :  { %v666_v22 = vpack.c.bf16 %v46_v21, %v45_v20  ;;  %v48_v24 = vld [vmem:[%s1063_s1 + $0x78] sm:$0xff]  ;;  %v32_v26 = vld [vmem:[%s1064_s0] sm:$0xff]  ;;  %v134_v28 = vld [vmem:[%s1065_s3 + $0x8] sm:$0xff] }
   0x7   :  { %v669_v25 = vpack.c.bf16 %v48_v24, %v47_v23  ;;  %v133_v27 = vld [vmem:[%s1065_s3] sm:$0xff]  ;;  %v135_v30 = vld [vmem:[%s1065_s3 + $0x10] sm:$0xff]  ;;  %v136_v31 = vld [vmem:[%s1065_s3 + $0x18] sm:$0xff] }
   0x8   :  { %652 = vmatpush3.bf16.msra.mxu0 %v651_v7  ;;  %v672_v29 = vpack.c.bf16 %v134_v28, %v133_v27  ;;  %v675_v32 = vpack.c.bf16 %v136_v31, %v135_v30  ;;  %v137_v33 = vld [vmem:[%s1065_s3 + $0x20] sm:$0xff]  ;;  %v138_v34 = vld [vmem:[%s1065_s3 + $0x28] sm:$0xff]  ;;  %v139_v36 = vld [vmem:[%s1065_s3 + $0x30] sm:$0xff] }
   0x9   :  { %653 = vmatprep.subr.bf16.mxu0 %v760_v0  ;;  %v678_v35 = vpack.c.bf16 %v138_v34, %v137_v33  ;;  %v140_v37 = vld [vmem:[%s1065_s3 + $0x38] sm:$0xff]  ;;  %v141_v39 = vld [vmem:[%s1065_s3 + $0x40] sm:$0xff]  ;;  %v142_v40 = vld [vmem:[%s1065_s3 + $0x48] sm:$0xff] }
   0xa   :  { %673 = vmatpush3.bf16.msra.mxu1 %v672_v29  ;;  %v681_v38 = vpack.c.bf16 %v140_v37, %v139_v36  ;;  %v684_v41 = vpack.c.bf16 %v142_v40, %v141_v39  ;;  %v143_v42 = vld [vmem:[%s1065_s3 + $0x50] sm:$0xff]  ;;  %v144_v43 = vld [vmem:[%s1065_s3 + $0x58] sm:$0xff]  ;;  %v145_v45 = vld [vmem:[%s1065_s3 + $0x60] sm:$0xff] }
   0xb   :  { %674 = vmatprep.subr.bf16.mxu1 %v760_v0  ;;  %v687_v44 = vpack.c.bf16 %v144_v43, %v143_v42  ;;  %v146_v46 = vld [vmem:[%s1065_s3 + $0x68] sm:$0xff]  ;;  %v147_v48 = vld [vmem:[%s1065_s3 + $0x70] sm:$0xff]  ;;  %v148_v49 = vld [vmem:[%s1065_s3 + $0x78] sm:$0xff] }
   0xc   :  { %655 = vmatpush3.bf16.msra.mxu0 %v654_v10  ;;  %v690_v47 = vpack.c.bf16 %v146_v46, %v145_v45  ;;  %v693_v50 = vpack.c.bf16 %v148_v49, %v147_v48  ;;  %v432_v51 = vld [vmem:[%s1066_s2] ss:$0 sm:$0xff]  ;;  %v234_v61 = vld [vmem:[%s1067_s5 + $0x8] sm:$0xff]  ;;  %v235_v63 = vld [vmem:[%s1067_s5 + $0x10] sm:$0xff] }
   0xd   :  { %656 = vmatprep.subr.bf16.mxu0 %v760_v0  ;;  %v233_v60 = vld [vmem:[%s1067_s5] sm:$0xff]  ;;  %v236_v1 = vld [vmem:[%s1067_s5 + $0x18] sm:$0xff]  ;;  %v239_v6 = vld [vmem:[%s1067_s5 + $0x30] sm:$0xff] }
   0xe   :  { %676 = vmatpush3.bf16.msra.mxu1 %v675_v32  ;;  %v696_v62 = vpack.c.bf16 %v234_v61, %v233_v60  ;;  %v699_v2 = vpack.c.bf16 %v236_v1, %v235_v63  ;;  %v237_v3 = vld [vmem:[%s1067_s5 + $0x20] sm:$0xff]  ;;  %v240_v7 = vld [vmem:[%s1067_s5 + $0x38] sm:$0xff]  ;;  %v242_v10 = vld [vmem:[%s1067_s5 + $0x48] sm:$0xff] }
   0xf   :  { %677 = vmatprep.subr.bf16.mxu1 %v760_v0  ;;  %v705_v8 = vpack.c.bf16 %v240_v7, %v239_v6  ;;  %v241_v9 = vld [vmem:[%s1067_s5 + $0x40] sm:$0xff]  ;;  %v243_v12 = vld [vmem:[%s1067_s5 + $0x50] sm:$0xff]  ;;  %v334_v31 = vld [vmem:[%s1069_s7 + $0x8] sm:$0xff] }
  0x10   :  { %658 = vmatpush3.bf16.msra.mxu0 %v657_v13  ;;  %v708_v11 = vpack.c.bf16 %v242_v10, %v241_v9  ;;  %v244_v13 = vld [vmem:[%s1067_s5 + $0x58] sm:$0xff]  ;;  %v245_v15 = vld [vmem:[%s1067_s5 + $0x60] sm:$0xff]  ;;  %v247_v18 = vld [vmem:[%s1067_s5 + $0x70] sm:$0xff] }
  0x11   :  { %659 = vmatprep.subr.bf16.mxu0 %v760_v0  ;;  %v711_v14 = vpack.c.bf16 %v244_v13, %v243_v12  ;;  %v434_v21 = vld [vmem:[%s1068_s4] ss:$0 sm:$0xff]  ;;  %v335_v33 = vld [vmem:[%s1069_s7 + $0x10] sm:$0xff]  ;;  %v336_v34 = vld [vmem:[%s1069_s7 + $0x18] sm:$0xff] }
  0x12   :  { %679 = vmatpush3.bf16.msra.mxu1 %v678_v35  ;;  %v333_v30 = vld [vmem:[%s1069_s7] sm:$0xff]  ;;  %v723_v35 = vpack.c.bf16 %v336_v34, %v335_v33  ;;  %v338_v37 = vld [vmem:[%s1069_s7 + $0x28] sm:$0xff]  ;;  %v339_v39 = vld [vmem:[%s1069_s7 + $0x30] sm:$0xff] }
  0x13   :  { %680 = vmatprep.subr.bf16.mxu1 %v760_v0  ;;  %v720_v32 = vpack.c.bf16 %v334_v31, %v333_v30  ;;  %v337_v36 = vld [vmem:[%s1069_s7 + $0x20] sm:$0xff]  ;;  %v340_v40 = vld [vmem:[%s1069_s7 + $0x38] sm:$0xff]  ;;  %v342_v43 = vld [vmem:[%s1069_s7 + $0x48] sm:$0xff] }
  0x14   :  { %661 = vmatpush3.bf16.msra.mxu0 %v660_v16  ;;  %v246_v16 = vld [vmem:[%s1067_s5 + $0x68] sm:$0xff]  ;;  %v341_v42 = vld [vmem:[%s1069_s7 + $0x40] sm:$0xff]  ;;  %v343_v45 = vld [vmem:[%s1069_s7 + $0x50] sm:$0xff] }
  0x15   :  { %662 = vmatprep.subr.bf16.mxu0 %v760_v0  ;;  %v714_v17 = vpack.c.bf16 %v246_v16, %v245_v15  ;;  %v344_v46 = vld [vmem:[%s1069_s7 + $0x58] sm:$0xff]  ;;  %v345_v48 = vld [vmem:[%s1069_s7 + $0x60] sm:$0xff]  ;;  %v346_v49 = vld [vmem:[%s1069_s7 + $0x68] sm:$0xff] }
  0x16   :  { %682 = vmatpush3.bf16.msra.mxu1 %v681_v38  ;;  %v726_v38 = vpack.c.bf16 %v338_v37, %v337_v36 }
  0x17   :  { %683 = vmatprep.subr.bf16.mxu1 %v760_v0 }
  0x18   :  { %664 = vmatpush3.bf16.msra.mxu0 %v663_v19  ;;  %v248_v19 = vld [vmem:[%s1067_s5 + $0x78] sm:$0xff] }
  0x19   :  { %665 = vmatprep.subr.bf16.mxu0 %v760_v0  ;;  %v717_v20 = vpack.c.bf16 %v248_v19, %v247_v18 }
  0x1a   :  { %685 = vmatpush3.bf16.msra.mxu1 %v684_v41  ;;  %v729_v41 = vpack.c.bf16 %v340_v40, %v339_v39 }
  0x1b   :  { %686 = vmatprep.subr.bf16.mxu1 %v760_v0 }
  0x1c   :  { %667 = vmatpush3.bf16.msra.mxu0 %v666_v22 }
  0x1d   :  { %668 = vmatprep.subr.bf16.mxu0 %v760_v0 }
  0x1e   :  { %688 = vmatpush3.bf16.msra.mxu1 %v687_v44  ;;  %v732_v44 = vpack.c.bf16 %v342_v43, %v341_v42 }
  0x1f   :  { %689 = vmatprep.subr.bf16.mxu1 %v760_v0 }
  0x20   :  { %670 = vmatpush3.bf16.msra.mxu0 %v669_v25 }
  0x21   :  { %695 = vmatprep.subr.bf16.mxu0 %v760_v0 }
  0x22   :  { %691 = vmatpush3.bf16.msra.mxu1 %v690_v47  ;;  %v735_v47 = vpack.c.bf16 %v344_v46, %v343_v45 }
  0x23   :  { %540 = vmatmul.mubr.f32.vlgmr.msra.gmra.mrb[0].mxu0 %v32_v26  ;;  %692 = vmatprep.subr.bf16.mxu1 %v760_v0 }
  0x24   :  { %609 = vmatprep.mubr.msk.f32.mxu0 %vm761_vm0, %v762_v4  ;;  %697 = vmatpush3.bf16.msra.mxu0 %v696_v62  ;;  %v438_v62 = vld [vmem:[%s1071_s8] ss:$0 sm:$0xff] }
  0x25   :  { %698 = vmatprep.subr.bf16.mxu0 %v760_v0 }
  0x26   :  { %694 = vmatpush3.bf16.msra.mxu1 %v693_v50  ;;  %v738_v50 = vpack.c.bf16 %v346_v49, %v345_v48 }
  0x27   :  { %719 = vmatprep.subr.bf16.mxu1 %v760_v0 }
  0x28   :  { %700 = vmatpush3.bf16.msra.mxu0 %v699_v2 }
  0x29   :  { %701 = vmatprep.subr.bf16.mxu0 %v760_v0 }
  0xf6   :  { %v122_v52 = vpop.f32.mrb[0].mxu0 }
  0xf7   :  { %v123_v53 = vadd.f32 %v432_v51, %v122_v52  ;;  %v541_v54 = vpop.f32.mrb[1].mxu0  ;;  %v347_v51 = vld [vmem:[%s1069_s7 + $0x70] sm:$0xff]  ;;  %v348_v52 = vld [vmem:[%s1069_s7 + $0x78] sm:$0xff] }
  0xf8   :  { %v436_v54 = vld [vmem:[%s1070_s6] ss:$0 sm:$0xff] }
  0xf9   :  { %v433_v55 = vmul.f32 -1.442695, %v123_v53 }
  0xfb   :  { %746 = vpow2.f32 %v433_v55 }
 0x105   :  { %v747_v56 = vpop.eup %746 }
 0x106   :  { %v129_v57 = vadd.f32 1.0, %v747_v56 }
 0x108   :  { %748 = vrcp.f32 %v129_v57 }
 0x112   :  { %v749_v58 = vpop.eup %748 }
 0x113   :  { %v132_v59 = vmul.f32 %v749_v58, %v123_v53  ;;  %v741_v53 = vpack.c.bf16 %v348_v52, %v347_v51 }
 0x115   :  { %575 = vmatmul.mubr.f32.vlgmr.msra.gmra.mrb[0].mxu1 %v132_v59 }
 0x116   :  { %644 = vmatprep.mubr.msk.f32.mxu1 %vm761_vm0, %v762_v4  ;;  %v238_v4 = vld [vmem:[%s1067_s5 + $0x28] sm:$0xff]  ;;  %721 = vmatpush3.bf16.msra.mxu1 %v720_v32 }
 0x117   :  { %v702_v5 = vpack.c.bf16 %v238_v4, %v237_v3  ;;  %722 = vmatprep.subr.bf16.mxu1 %v760_v0 }
 0x119   :  { %703 = vmatpush3.bf16.msra.mxu0 %v702_v5 }
 0x11a   :  { %704 = vmatprep.subr.bf16.mxu0 %v760_v0  ;;  %724 = vmatpush3.bf16.msra.mxu1 %v723_v35 }
 0x11b   :  { %725 = vmatprep.subr.bf16.mxu1 %v760_v0 }
 0x11d   :  { %706 = vmatpush3.bf16.msra.mxu0 %v705_v8 }
 0x11e   :  { %707 = vmatprep.subr.bf16.mxu0 %v760_v0  ;;  %727 = vmatpush3.bf16.msra.mxu1 %v726_v38 }
 0x11f   :  { %728 = vmatprep.subr.bf16.mxu1 %v760_v0 }
 0x121   :  { %709 = vmatpush3.bf16.msra.mxu0 %v708_v11 }
 0x122   :  { %710 = vmatprep.subr.bf16.mxu0 %v760_v0  ;;  %730 = vmatpush3.bf16.msra.mxu1 %v729_v41 }
 0x123   :  { %731 = vmatprep.subr.bf16.mxu1 %v760_v0 }
 0x125   :  { %712 = vmatpush3.bf16.msra.mxu0 %v711_v14 }
 0x126   :  { %713 = vmatprep.subr.bf16.mxu0 %v760_v0  ;;  %733 = vmatpush3.bf16.msra.mxu1 %v732_v44 }
 0x127   :  { %734 = vmatprep.subr.bf16.mxu1 %v760_v0 }
 0x129   :  { %715 = vmatpush3.bf16.msra.mxu0 %v714_v17 }
 0x12a   :  { %716 = vmatprep.subr.bf16.mxu0 %v760_v0  ;;  %736 = vmatpush3.bf16.msra.mxu1 %v735_v47 }
 0x12b   :  { %737 = vmatprep.subr.bf16.mxu1 %v760_v0 }
 0x12d   :  { %718 = vmatpush3.bf16.msra.mxu0 %v717_v20 }
 0x12e   :  { %739 = vmatpush3.bf16.msra.mxu1 %v738_v50 }
 0x12f   :  { %740 = vmatprep.subr.bf16.mxu1 %v760_v0 }
 0x132   :  { %742 = vmatpush3.bf16.msra.mxu1 %v741_v53 }
 0x1e8   :  { %v222_v22 = vpop.f32.mrb[0].mxu1 }
 0x1e9   :  { %v223_v23 = vadd.f32 %v434_v21, %v222_v22  ;;  %v576_v24 = vpop.f32.mrb[1].mxu1 }
 0x1eb   :  { %v435_v25 = vmul.f32 -1.442695, %v223_v23 }
 0x1ed   :  { %750 = vpow2.f32 %v435_v25 }
 0x1f7   :  { %v751_v26 = vpop.eup %750 }
 0x1f8   :  { %v229_v27 = vadd.f32 1.0, %v751_v26 }
 0x1fa   :  { %752 = vrcp.f32 %v229_v27 }
 0x204   :  { %v753_v28 = vpop.eup %752 }
 0x205   :  { %v232_v29 = vmul.f32 %v753_v28, %v223_v23 }
 0x207   :  { %610 = vmatmul.mubr.f32.vlgmr.msra.gmra.mrb[2].mxu0 %v232_v29 }
 0x2da   :  { %v322_v55 = vpop.f32.mrb[2].mxu0 }
 0x2db   :  { %v323_v56 = vadd.f32 %v436_v54, %v322_v55  ;;  %v611_v57 = vpop.f32.mrb[3].mxu0 }
 0x2dd   :  { %v437_v58 = vmul.f32 -1.442695, %v323_v56 }
 0x2df   :  { %754 = vpow2.f32 %v437_v58 }
 0x2e9   :  { %v755_v0 = vpop.eup %754 }
 0x2ea   :  { %v329_v59 = vadd.f32 1.0, %v755_v0 }
 0x2ec   :  { %756 = vrcp.f32 %v329_v59 }
 0x2f6   :  { %v757_v60 = vpop.eup %756 }
 0x2f7   :  { %v332_v61 = vmul.f32 %v757_v60, %v323_v56 }
 0x2f9   :  { %645 = vmatmul.mubr.f32.vlgmr.msra.gmra.mrb[2].mxu1 %v332_v61 }
 0x3cc   :  { %v422_v63 = vpop.f32.mrb[2].mxu1 }
 0x3cd   :  { %v423_v1 = vadd.f32 %v438_v62, %v422_v63  ;;  %v646_v2 = vpop.f32.mrb[3].mxu1 }
 0x3cf   :  { %758 = vtanh.f32 %v423_v1 }
 0x3d9   :  { %v759_v3 = vpop.eup %758 }
 0x3da   :  { %427 = vst [vmem:[%s1072_s9] sm:$0xff] %v759_v3 }

</bundles_post_ra>
